<compile_context>
chip_gen: v6e
topology: v6e:2x2x1
jax: 0.10.0
libtpu: 0.0.40
codegen_flags: <defaults>
</compile_context>

<pallas_src>
import functools

import jax
import jax.numpy as jnp
from jax.experimental import pallas as pl
from jax.experimental.pallas import tpu as pltpu

CITY_DIM = 2       # (x, y) coordinates
EMBED_DIM = 128    # lane-dense embedding width
DEFAULT_ROW_TILE = 2048   # rows per grid step (~1 MiB f32 output block)


def _city_embedding_kernel(x_ref, w_ref, b_ref, o_ref, *, n_city):
    """Fused depot/city embedding for one row tile.

    x_ref : [TR, 2]     flattened coordinates (row r = batch r//N, pos r%N)
    w_ref : [2, 2, D]   stacked weights: [0]=depot_embed, [1]=city_embed
    b_ref : [2, D]      stacked biases:  [0]=depot_embed, [1]=city_embed
    o_ref : [TR, D]     embeddings (rows with pos==0 use depot weights)
    """
    x = x_ref[...].astype(jnp.float32)                   # [TR, 2]
    x0 = x[:, 0:1]                                       # [TR, 1]
    x1 = x[:, 1:2]                                       # [TR, 1]

    w = w_ref[...].astype(jnp.float32)                   # [2, 2, D]
    b = b_ref[...].astype(jnp.float32)                   # [2, D]

    # K=2 "matmul" as VPU broadcast-FMAs (MXU would be wasted on K=2).
    depot_out = x0 * w[0, 0:1, :] + x1 * w[0, 1:2, :] + b[0:1, :]   # [TR, D]
    city_out = x0 * w[1, 0:1, :] + x1 * w[1, 1:2, :] + b[1:2, :]    # [TR, D]

    tr, d = city_out.shape
    # Global flattened row index of each element; depot rows are pos % N == 0.
    row = (pl.program_id(0) * tr
           + jax.lax.broadcasted_iota(jnp.int32, (tr, d), 0))
    is_depot = (row % n_city) == 0
    # Single unmasked lane-dense store; depot rows selected via jnp.where.
    o_ref[...] = jnp.where(is_depot, depot_out, city_out).astype(o_ref.dtype)


def city_embedding(city, depot_w, depot_b, city_w, city_b, *,
                   row_tile=DEFAULT_ROW_TILE, out_dtype=None):
    """city: [B, N, 2] -> [B, N, D]  (== torch CityEmbedding.forward)."""
    B, N, K = city.shape
    assert K == CITY_DIM, city.shape
    D = depot_w.shape[1]
    out_dtype = city.dtype if out_dtype is None else out_dtype

    R = B * N
    x = city.reshape(R, K)                               # free, row-major
    w = jnp.stack([depot_w, city_w], axis=0)             # [2, 2, D]
    b = jnp.stack([depot_b, city_b], axis=0)             # [2, D]

    # Tile the flattened row axis.  If everything fits in one tile, use a
    # single full-array block (block dim == array dim, so no (8,) constraint).
    tr = R if R <= row_tile else row_tile
    grid = (pl.cdiv(R, tr),)

    out = pl.pallas_call(
        functools.partial(_city_embedding_kernel, n_city=N),
        out_shape=jax.ShapeDtypeStruct((R, D), out_dtype),
        grid=grid,
        in_specs=[
            pl.BlockSpec((tr, K), lambda i: (i, 0)),
            pl.BlockSpec((2, K, D), lambda i: (0, 0, 0)),
            pl.BlockSpec((2, D), lambda i: (0, 0)),
        ],
        out_specs=pl.BlockSpec((tr, D), lambda i: (i, 0)),
        compiler_params=pltpu.CompilerParams(
            dimension_semantics=("parallel",)),
    )(x, w, b)
    return out.reshape(B, N, D)


# ----------------------------------------------------------------------------
if __name__ == "__main__":
    key = jax.random.PRNGKey(0)
    kparam, kdata = jax.random.split(key)

    def lin_init(k, din, dout):
        """PyTorch nn.Linear default init: U(-1/sqrt(din), 1/sqrt(din))."""
        k1, k2 = jax.random.split(k)
        bound = 1.0 / (din ** 0.5)
        w = jax.random.uniform(k1, (din, dout), jnp.float32, -bound, bound)
        b = jax.random.uniform(k2, (dout,), jnp.float32, -bound, bound)
        return w, b

    k1, k2 = jax.random.split(kparam)
    depot_w, depot_b = lin_init(k1, CITY_DIM, EMBED_DIM)
    city_w, city_b = lin_init(k2, CITY_DIM, EMBED_DIM)

    def reference(city):
        ref_depot = city[:, 0:1, :] @ depot_w + depot_b
        ref_city = city[:, 1:, :] @ city_w + city_b
        return jnp.concatenate([ref_depot, ref_city], axis=1)

    # Case 1: tiny problem, single grid step (block == full array).
    B, N = 2, 8
    city = jax.random.uniform(kdata, (B, N, CITY_DIM), jnp.float32)
    out = jax.block_until_ready(
        city_embedding(city, depot_w, depot_b, city_w, city_b))
    assert out.shape == (B, N, EMBED_DIM), out.shape
    assert bool(jnp.all(jnp.isfinite(out)))
    assert bool(jnp.allclose(out, reference(city), atol=1e-5, rtol=1e-5))

    # Case 2: multi-tile path with a ragged last block (B*N=150, tile=64).
    B2, N2 = 3, 50
    city2 = jax.random.uniform(jax.random.PRNGKey(1), (B2, N2, CITY_DIM),
                               jnp.float32)
    out2 = jax.block_until_ready(
        city_embedding(city2, depot_w, depot_b, city_w, city_b, row_tile=64))
    assert out2.shape == (B2, N2, EMBED_DIM), out2.shape
    assert bool(jnp.all(jnp.isfinite(out2)))
    assert bool(jnp.allclose(out2, reference(city2), atol=1e-5, rtol=1e-5))

    print("KERNEL_OK")
</pallas_src>

<mosaic_0001>
module attributes {stable_mosaic.version = 11 : i64} {
  func.func @_city_embedding_kernel(%arg0: i32, %arg1: memref<16x2xf32, #tpu.memory_space<vmem>>, %arg2: memref<2x2x128xf32, #tpu.memory_space<vmem>>, %arg3: memref<2x128xf32, #tpu.memory_space<vmem>>, %arg4: memref<16x128xf32, #tpu.memory_space<vmem>>) attributes {dimension_semantics = [#tpu.dimension_semantics<parallel>], iteration_bounds = array<i64: 1>, scalar_prefetch = 0 : i64, scratch_operands = 0 : i64, tpu.core_type = #tpu.core_type<tc>, window_params = [{transform_indices = @transform_0, window_bounds = array<i64: 16, 2>}, {pipeline_mode = #tpu.pipeline_mode<synchronous>, transform_indices = @transform_1, window_bounds = array<i64: 2, 2, 128>}, {pipeline_mode = #tpu.pipeline_mode<synchronous>, transform_indices = @transform_2, window_bounds = array<i64: 2, 128>}, {transform_indices = @transform_3, window_bounds = array<i64: 16, 128>}]} {
    %c0 = arith.constant 0 : index
    %c0_0 = arith.constant 0 : index
    %0 = vector.load %arg1[%c0, %c0_0] : memref<16x2xf32, #tpu.memory_space<vmem>>, vector<16x2xf32>
    %1 = vector.extract_strided_slice %0 {offsets = [0, 0], sizes = [16, 1], strides = [1, 1]} : vector<16x2xf32> to vector<16x1xf32>
    %2 = vector.extract_strided_slice %0 {offsets = [0, 1], sizes = [16, 1], strides = [1, 1]} : vector<16x2xf32> to vector<16x1xf32>
    %c0_1 = arith.constant 0 : index
    %c0_2 = arith.constant 0 : index
    %c0_3 = arith.constant 0 : index
    %3 = vector.load %arg2[%c0_1, %c0_2, %c0_3] : memref<2x2x128xf32, #tpu.memory_space<vmem>>, vector<2x2x128xf32>
    %c0_4 = arith.constant 0 : index
    %c0_5 = arith.constant 0 : index
    %4 = vector.load %arg3[%c0_4, %c0_5] : memref<2x128xf32, #tpu.memory_space<vmem>>, vector<2x128xf32>
    %5 = vector.extract_strided_slice %3 {offsets = [0, 0, 0], sizes = [1, 1, 128], strides = [1, 1, 1]} : vector<2x2x128xf32> to vector<1x1x128xf32>
    %6 = vector.shape_cast %5 : vector<1x1x128xf32> to vector<1x128xf32>
    %7 = vector.broadcast %1 : vector<16x1xf32> to vector<16x128xf32>
    %8 = vector.broadcast %6 : vector<1x128xf32> to vector<16x128xf32>
    %9 = arith.mulf %7, %8 : vector<16x128xf32>
    %10 = vector.extract_strided_slice %3 {offsets = [0, 1, 0], sizes = [1, 1, 128], strides = [1, 1, 1]} : vector<2x2x128xf32> to vector<1x1x128xf32>
    %11 = vector.shape_cast %10 : vector<1x1x128xf32> to vector<1x128xf32>
    %12 = vector.broadcast %2 : vector<16x1xf32> to vector<16x128xf32>
    %13 = vector.broadcast %11 : vector<1x128xf32> to vector<16x128xf32>
    %14 = arith.mulf %12, %13 : vector<16x128xf32>
    %15 = arith.addf %9, %14 : vector<16x128xf32>
    %16 = vector.extract_strided_slice %4 {offsets = [0, 0], sizes = [1, 128], strides = [1, 1]} : vector<2x128xf32> to vector<1x128xf32>
    %17 = vector.broadcast %16 : vector<1x128xf32> to vector<16x128xf32>
    %18 = arith.addf %15, %17 : vector<16x128xf32>
    %19 = vector.extract_strided_slice %3 {offsets = [1, 0, 0], sizes = [1, 1, 128], strides = [1, 1, 1]} : vector<2x2x128xf32> to vector<1x1x128xf32>
    %20 = vector.shape_cast %19 : vector<1x1x128xf32> to vector<1x128xf32>
    %21 = vector.broadcast %1 : vector<16x1xf32> to vector<16x128xf32>
    %22 = vector.broadcast %20 : vector<1x128xf32> to vector<16x128xf32>
    %23 = arith.mulf %21, %22 : vector<16x128xf32>
    %24 = vector.extract_strided_slice %3 {offsets = [1, 1, 0], sizes = [1, 1, 128], strides = [1, 1, 1]} : vector<2x2x128xf32> to vector<1x1x128xf32>
    %25 = vector.shape_cast %24 : vector<1x1x128xf32> to vector<1x128xf32>
    %26 = vector.broadcast %2 : vector<16x1xf32> to vector<16x128xf32>
    %27 = vector.broadcast %25 : vector<1x128xf32> to vector<16x128xf32>
    %28 = arith.mulf %26, %27 : vector<16x128xf32>
    %29 = arith.addf %23, %28 : vector<16x128xf32>
    %30 = vector.extract_strided_slice %4 {offsets = [1, 0], sizes = [1, 128], strides = [1, 1]} : vector<2x128xf32> to vector<1x128xf32>
    %31 = vector.broadcast %30 : vector<1x128xf32> to vector<16x128xf32>
    %32 = arith.addf %29, %31 : vector<16x128xf32>
    %c16_i32 = arith.constant 16 : i32
    %33 = arith.muli %arg0, %c16_i32 : i32
    %34 = tpu.iota {dimensions = array<i32: 0>} : vector<16x128xi32>
    %35 = vector.broadcast %33 : i32 to vector<16x128xi32>
    %36 = arith.addi %35, %34 : vector<16x128xi32>
    %c8_i32 = arith.constant 8 : i32
    %c0_i32 = arith.constant 0 : i32
    %37 = arith.cmpi eq, %c8_i32, %c0_i32 : i32
    %c1_i32 = arith.constant 1 : i32
    %38 = arith.select %37, %c1_i32, %c8_i32 : i32
    %39 = vector.broadcast %38 : i32 to vector<16x128xi32>
    %40 = arith.remsi %36, %39 : vector<16x128xi32>
    %c0_i32_6 = arith.constant 0 : i32
    %41 = vector.broadcast %c0_i32_6 : i32 to vector<16x128xi32>
    %42 = arith.cmpi ne, %40, %41 : vector<16x128xi32>
    %c0_i32_7 = arith.constant 0 : i32
    %43 = vector.broadcast %c0_i32_7 : i32 to vector<16x128xi32>
    %44 = arith.cmpi slt, %40, %43 : vector<16x128xi32>
    %c0_i32_8 = arith.constant 0 : i32
    %45 = arith.cmpi slt, %38, %c0_i32_8 : i32
    %46 = vector.broadcast %45 : i1 to vector<16x128xi1>
    %47 = vector.broadcast %46 : vector<16x128xi1> to vector<16x128xi1>
    %48 = arith.xori %44, %47 : vector<16x128xi1>
    %49 = arith.andi %48, %42 : vector<16x128xi1>
    %50 = vector.broadcast %38 : i32 to vector<16x128xi32>
    %51 = arith.addi %40, %50 : vector<16x128xi32>
    %52 = arith.select %49, %51, %40 : vector<16x128xi1>, vector<16x128xi32>
    %c0_i32_9 = arith.constant 0 : i32
    %53 = vector.broadcast %c0_i32_9 : i32 to vector<16x128xi32>
    %54 = arith.cmpi eq, %52, %53 : vector<16x128xi32>
    %55 = arith.select %54, %18, %32 : vector<16x128xi1>, vector<16x128xf32>
    %c0_10 = arith.constant 0 : index
    %c0_11 = arith.constant 0 : index
    %56 = vector.load %arg4[%c0_10, %c0_11] : memref<16x128xf32, #tpu.memory_space<vmem>>, vector<16x128xf32>
    tpu.vector_store %arg4[%c0_10, %c0_11], %55 {strides = array<i32>} : memref<16x128xf32, #tpu.memory_space<vmem>>, vector<16x128xf32>,
    return
  }
  func.func @transform_0(%arg0: i32) -> (i32, i32) {
    %c0_i32 = arith.constant 0 : i32
    %c0_i32_0 = arith.constant 0 : i32
    return %arg0, %c0_i32 : i32, i32
  }
  func.func @transform_1(%arg0: i32) -> (i32, i32, i32) {
    %c0_i32 = arith.constant 0 : i32
    %c0_i32_0 = arith.constant 0 : i32
    %c0_i32_1 = arith.constant 0 : i32
    %c0_i32_2 = arith.constant 0 : i32
    return %c0_i32, %c0_i32_0, %c0_i32_1 : i32, i32, i32
  }
  func.func @transform_2(%arg0: i32) -> (i32, i32) {
    %c0_i32 = arith.constant 0 : i32
    %c0_i32_0 = arith.constant 0 : i32
    %c0_i32_1 = arith.constant 0 : i32
    return %c0_i32, %c0_i32_0 : i32, i32
  }
  func.func @transform_3(%arg0: i32) -> (i32, i32) {
    %c0_i32 = arith.constant 0 : i32
    %c0_i32_0 = arith.constant 0 : i32
    return %arg0, %c0_i32 : i32, i32
  }
}

</mosaic_0001>

<bundles_post_ra>
// kernel: tpu_custom_call.1
= control target key start
LH: loop header
LB: loop body
LE: loop exit
PB: predicated region body
PF: predicated region fallthrough
CT: control target
= control target key end

     0   :  { %v161_v1 = vmov 1   ;;  %v162_v2 = vmov 0   ;;  %s204_s0 = inlined_call_operand.vmem [shape: f32[16,2], index: 0, kind: input, shape index: {}]   ;;  %s205_s1 = inlined_call_operand.vmem [shape: f32[2,2,128], index: 1, kind: input, shape index: {}]   ;;  %s206_s2 = inlined_call_operand.vmem [shape: f32[2,128], index: 2, kind: input, shape index: {}]   ;;  %s207_s3 = inlined_call_operand.hbm [shape: f32[16,128], index: 3, kind: output, shape index: {}]  }
   0x1   :  { %v15_v0 = vld [vmem:[%s204_s0] sm:$0xff]  ;;  %137 = vset.pattern.permute.xlu1 %v161_v1  ;;  %136 = vset.pattern.permute.xlu0 %v162_v2 }
   0x2   :  { %8 = vsyncpa [#allocation3], 0  ;;  %37 = vperm.xlu1 %137, %v15_v0   ;;  %22 = vperm.xlu0 %136, %v15_v0   ;;  %v16_v3 = vld [vmem:[%s204_s0 + $0x8] sm:$0xff]  ;;  %v30_v4 = vlaneseq  ;;  %v17_v8 = vld [vmem:[%s205_s1] sm:$0x3]  ;;  %s163_s0 = smov [#allocation2]  }
   0x3   :  { %v18_v9 = vld [vmem:[%s205_s1 + $0x2] sm:$0x3]  ;;  %v19_v12 = vld [vmem:[%s206_s2] sm:$0x3]  ;;  %s120_s1 = sshll.u32 %s163_s0, 4  ;;  %s121_s1 = int_to_ptr.vmem [resolvable:$true] %s120_s1 }
   0x4   :  { %v31_v5 = vshrl.u32 %v30_v4, 7  ;;  %s139_s2 = scalar_lea.vmem %s121_s1, 256  ;;  %p144_p1 = scmp.lt.s32.totalorder %s121_s1, %s121_s1 }
   0x5   :  { %p140_p0 = scmp.ne.s32.totalorder %s121_s1, %s139_s2  ;;  %p145_p2 = scmp.lt.s32.totalorder %s139_s2, %s139_s2 }
   0x6   :  { %41 = vperm.xlu1 %137, %v16_v3   ;;  %27 = vperm.xlu0 %136, %v16_v3   ;;  %v46_v6 = vsub.s32 1, %v31_v5  ;;  %v32_v7 = vsub.s32 0, %v31_v5  ;;  %v81_v19 = vadd.s32 8, %v31_v5  ;;  %v89_v20 = vand.u32 7, %v31_v5 }
   0x7   :  { %p146_p3 = por %p145_p2, %p144_p1 }
   0x8   :  { %v47_v10 = vrot.slane %v17_v8, %v46_v6  ;;  %v67_v11 = vrot.slane %v18_v9, %v46_v6  ;;  %v33_v13 = vrot.slane %v17_v8, %v32_v7  ;;  %v61_v14 = vrot.slane %v18_v9, %v32_v7 }
   0x9   :  { %v55_v16 = vrot.slane %v19_v12, %v32_v7  ;;  %v75_v17 = vrot.slane %v19_v12, %v46_v6  ;;  %v96_v29 = vand.u32 7, %v81_v19  ;;  %vm109_vm0 = vcmp.eq.s32.totalorder %v89_v20, 0  ;;  %p147_p4 = pnand %p146_p3, %p140_p0 }
   0xa   :  { %138 = vset.pattern.permute.xlu0 %v161_v1 }
   0xb   :  { %vm110_vm1 = vcmp.eq.s32.totalorder %v96_v29, 0 }
  0x7d   :  { %v38_v15 = vpop.permute.xlu1 %37  ;;  %v23_v18 = vpop.permute.xlu0 %22 }
  0x7e   :  { %v48_v21 = vmul.f32 %v47_v10, %v38_v15  ;;  %v68_v22 = vmul.f32 %v67_v11, %v38_v15  ;;  %v34_v23 = vmul.f32 %v33_v13, %v23_v18  ;;  %v62_v24 = vmul.f32 %v61_v14, %v23_v18 }
  0x80   :  { %v50_v25 = vadd.f32 %v48_v21, %v34_v23  ;;  %v70_v26 = vadd.f32 %v68_v22, %v62_v24 }
  0x81   :  { %v42_v27 = vpop.permute.xlu1 %41  ;;  %v28_v28 = vpop.permute.xlu0 %27 }
  0x82   :  { %v56_v30 = vadd.f32 %v55_v16, %v50_v25  ;;  %v76_v31 = vadd.f32 %v75_v17, %v70_v26  ;;  %v49_v32 = vmul.f32 %v47_v10, %v42_v27  ;;  %v69_v33 = vmul.f32 %v67_v11, %v42_v27 }
  0x83   :  { %v35_v34 = vmul.f32 %v33_v13, %v28_v28  ;;  %v63_v35 = vmul.f32 %v61_v14, %v28_v28 }
  0x84   :  { %v111_v36 = vsel %vm109_vm0, %v56_v30, %v76_v31 }
  0x85   :  { %v51_v37 = vadd.f32 %v49_v32, %v35_v34  ;;  %v71_v38 = vadd.f32 %v69_v33, %v63_v35  ;;  %113 = vst [vmem:[#allocation2] sm:$0xff] %v111_v36 }
  0x87   :  { %v57_v39 = vadd.f32 %v55_v16, %v51_v37  ;;  %v77_v40 = vadd.f32 %v75_v17, %v71_v38 }
  0x89   :  { %v112_v41 = vsel %vm110_vm1, %v57_v39, %v77_v40 }
  0x8a   :  { %114 = vst [vmem:[#allocation2 + $0x8] sm:$0xff] %v112_v41 }
  0x8b   :  { %150 = shalt.err (!%p147_p4)
}
  0x8c   :  { %s164_s22 = smov 128   ;;  %s165_s23 = smov 8  }
  0x8d   :  { %126 = dma.vmem_to_hbm [thread:$0]  %s121_s1, 256, %s207_s3, [#allocation3], %s164_s22, %s164_s22, %s165_s23  }
  0x8e   :  { %159 = dma.done.wait [#allocation3], 256  }
  0x8f   :  { %160 = vsyncadd [#allocation3], 4294967040 }
  0x90   :  { %130 = vsyncpa [#allocation3], 1 }

</bundles_post_ra>
